<compile_context>
chip_gen: v7x
topology: tpu7x:2x2x1
jax: 0.10.0
libtpu: 0.0.40
codegen_flags: <defaults>
</compile_context>

<pallas_src>
import numpy as np
import jax
import jax.numpy as jnp
from jax import lax
from jax.experimental import pallas as pl
from jax.experimental.pallas import tpu as pltpu


def _pick_tile(n, candidates=(512, 256, 128)):
    """Largest candidate tile that evenly divides n, else n itself."""
    for c in candidates:
        if n % c == 0:
            return c
    return n


def _make_nonlocal_kernel(dim_inner):
    def kernel(x_ref, mp_ref,
               wth_ref, bth_ref,      # theta proj  (scale pre-folded)
               wpg_ref, bpg_ref,      # fused phi|g proj
               wout_ref, bout_ref,    # out proj    (BN scale/bias pre-folded)
               o_ref):
        x = x_ref[0]                                   # (tN, C_in) f32 -- residual
        mp = mp_ref[0]                                 # (M,  C_in) f32

        x_bf = x.astype(jnp.bfloat16)
        mp_bf = mp.astype(jnp.bfloat16)

        # 1x1x1 convs == channel matmuls (MXU, bf16 operands, f32 accumulation)
        theta = jnp.dot(x_bf, wth_ref[...],
                        preferred_element_type=jnp.float32) + bth_ref[...]
        pg = jnp.dot(mp_bf, wpg_ref[...],
                     preferred_element_type=jnp.float32) + bpg_ref[...]
        phi = pg[:, :dim_inner]                        # (M, dim_inner)
        g = pg[:, dim_inner:]                          # (M, dim_inner)

        # attn = theta @ phi^T : contract last axes of both (no transpose of phi)
        attn = lax.dot_general(
            theta.astype(jnp.bfloat16), phi.astype(jnp.bfloat16),
            (((1,), (1,)), ((), ())),
            preferred_element_type=jnp.float32)        # (tN, M) f32

        # numerically-stable softmax with deferred normalization
        attn = attn - jnp.max(attn, axis=-1, keepdims=True)
        p = jnp.exp(attn)                              # (tN, M) f32
        row_sum = jnp.sum(p, axis=-1, keepdims=True)   # (tN, 1) f32

        # t = p @ g (unnormalized), then normalize the small (tN, dim_inner) tensor
        t = jnp.dot(p.astype(jnp.bfloat16), g.astype(jnp.bfloat16),
                    preferred_element_type=jnp.float32)
        t = t * pl.reciprocal(row_sum, approx=True)

        # output 1x1x1 conv (BN folded into weights/bias) + residual
        out = jnp.dot(t.astype(jnp.bfloat16), wout_ref[...],
                      preferred_element_type=jnp.float32) + bout_ref[...] + x
        o_ref[0] = out.astype(o_ref.dtype)

    return kernel


def nonlocal_block_pallas(x, params, dim_inner):
    """x: (B, C_in, T, H, W) float32, NCTHW like PyTorch."""
    B, C_in, T, H, W = x.shape
    C_out = params["w_out"].shape[1]
    assert C_out == C_in, "residual add requires dim_out == dim_in"
    assert H % 2 == 0 and W % 2 == 0, "maxpool glue assumes even H and W"

    # single NCTHW -> channels-last transpose; maxpool runs on the transposed tensor
    x_cl = jnp.transpose(x, (0, 2, 3, 4, 1))                         # (B,T,H,W,C)
    mp_cl = x_cl.reshape(B, T, H // 2, 2, W // 2, 2, C_in).max(axis=(3, 5))

    N = T * H * W
    M = T * (H // 2) * (W // 2)
    x_flat = x_cl.reshape(B, N, C_in)
    mp_flat = mp_cl.reshape(B, M, C_in)

    # ---- offline parameter folding (done once, outside the hot loop) ----
    scale = jnp.float32(dim_inner) ** jnp.float32(-0.5)
    w_theta = (params["w_theta"] * scale).astype(jnp.bfloat16)        # fold 1/sqrt(d)
    b_theta = (params["b_theta"] * scale).astype(jnp.float32)
    w_pg = jnp.concatenate([params["w_phi"], params["w_g"]], axis=1).astype(jnp.bfloat16)
    b_pg = jnp.concatenate([params["b_phi"], params["b_g"]], axis=1).astype(jnp.float32)
    bn_scale = params["bn_scale"]                                     # (1, C_out)
    w_out = (params["w_out"] * bn_scale).astype(jnp.bfloat16)         # fold BN scale
    b_out = (params["b_out"] * bn_scale + params["bn_bias"]).astype(jnp.float32)

    tN = _pick_tile(N)
    grid = (B, N // tN)

    kernel = _make_nonlocal_kernel(dim_inner)

    tile_spec = lambda shape: pl.BlockSpec(shape, lambda b, n: (b, n, 0))
    batch_spec = lambda shape: pl.BlockSpec(shape, lambda b, n: (b, 0, 0))
    full_spec = lambda shape: pl.BlockSpec(shape, lambda b, n: (0, 0))

    out_flat = pl.pallas_call(
        kernel,
        out_shape=jax.ShapeDtypeStruct((B, N, C_out), jnp.float32),
        grid=grid,
        in_specs=[
            tile_spec((1, tN, C_in)),                    # x_flat tile
            batch_spec((1, M, C_in)),                    # mp_flat (full M, per batch)
            full_spec((C_in, dim_inner)),                # w_theta (scaled, bf16)
            full_spec((1, dim_inner)),                   # b_theta (scaled)
            full_spec((C_in, 2 * dim_inner)),            # w_phi|w_g fused (bf16)
            full_spec((1, 2 * dim_inner)),               # b_phi|b_g fused
            full_spec((dim_inner, C_out)),               # w_out (BN-folded, bf16)
            full_spec((1, C_out)),                       # b_out (BN-folded)
        ],
        out_specs=tile_spec((1, tN, C_out)),
        compiler_params=pltpu.CompilerParams(
            dimension_semantics=("parallel", "parallel"),
            vmem_limit_bytes=48 * 1024 * 1024,
        ),
    )(x_flat, mp_flat, w_theta, b_theta, w_pg, b_pg, w_out, b_out)

    # back to NCTHW
    out = out_flat.reshape(B, T, H, W, C_out)
    out = jnp.transpose(out, (0, 4, 1, 2, 3))
    return out


def nonlocal_block_ref(x, params, dim_inner):
    """Pure-JAX f32 reference mirroring the PyTorch forward (BN in eval mode)."""
    B, C_in, T, H, W = x.shape
    mp = x.reshape(B, C_in, T, H // 2, 2, W // 2, 2).max(axis=(4, 6))

    def conv1x1(v, w, b):  # v: (B, C, T, H, W), w: (C_in, C_out)
        vf = jnp.transpose(v, (0, 2, 3, 4, 1))           # (B,T,H,W,C)
        o = jnp.einsum("bthwc,cd->bthwd", vf, w) + b
        return jnp.transpose(o, (0, 4, 1, 2, 3))

    theta = conv1x1(x, params["w_theta"], params["b_theta"][0])
    phi = conv1x1(mp, params["w_phi"], params["b_phi"][0])
    g = conv1x1(mp, params["w_g"], params["b_g"][0])

    theta2 = theta.reshape(B, dim_inner, -1)             # (B, Ci, N)
    phi2 = phi.reshape(B, dim_inner, -1)                 # (B, Ci, M)
    g2 = g.reshape(B, dim_inner, -1)                     # (B, Ci, M)

    tp = jnp.einsum("bcn,bcm->bnm", theta2, phi2) * (dim_inner ** -0.5)
    p = jax.nn.softmax(tp, axis=-1)
    t = jnp.einsum("bcm,bnm->bcn", g2, p).reshape(theta.shape)

    out = conv1x1(t, params["w_out"], params["b_out"][0])
    sc = params["bn_scale"][0][None, :, None, None, None]
    bi = params["bn_bias"][0][None, :, None, None, None]
    out = out * sc + bi
    return out + x


if __name__ == "__main__":
    B, C_in, T, H, W = 2, 8, 2, 8, 8
    dim_inner, dim_out = 8, 8

    key = jax.random.PRNGKey(0)
    ks = jax.random.split(key, 13)

    def w(k, shape, s=0.1):
        return jax.random.normal(k, shape, jnp.float32) * s

    # BatchNorm (eval): fold gamma/beta/running stats into scale & bias
    gamma = 1.0 + 0.05 * jax.random.normal(ks[8], (dim_out,), jnp.float32)
    beta = 0.05 * jax.random.normal(ks[9], (dim_out,), jnp.float32)
    run_mean = 0.05 * jax.random.normal(ks[10], (dim_out,), jnp.float32)
    run_var = 1.0 + 0.05 * jax.random.uniform(ks[11], (dim_out,), jnp.float32)
    eps = 1e-5
    bn_scale = gamma / jnp.sqrt(run_var + eps)
    bn_bias = beta - run_mean * bn_scale

    params = {
        "w_theta": w(ks[0], (C_in, dim_inner)), "b_theta": w(ks[1], (1, dim_inner)),
        "w_phi": w(ks[2], (C_in, dim_inner)), "b_phi": w(ks[3], (1, dim_inner)),
        "w_g": w(ks[4], (C_in, dim_inner)), "b_g": w(ks[5], (1, dim_inner)),
        "w_out": w(ks[6], (dim_inner, dim_out)), "b_out": w(ks[7], (1, dim_out)),
        "bn_scale": bn_scale.reshape(1, dim_out),
        "bn_bias": bn_bias.reshape(1, dim_out),
    }

    x = jax.random.normal(ks[12], (B, C_in, T, H, W), jnp.float32)

    out = jax.block_until_ready(nonlocal_block_pallas(x, params, dim_inner))
    ref = jax.block_until_ready(nonlocal_block_ref(x, params, dim_inner))

    # bf16 MXU operands + approx reciprocal => small numeric deviation vs f32 ref
    np.testing.assert_allclose(np.asarray(out), np.asarray(ref), rtol=1e-2, atol=1e-2)
    print("KERNEL_OK")
</pallas_src>

<mosaic_0001>
module attributes {stable_mosaic.version = 11 : i64} {
  func.func @kernel(%arg0: i32, %arg1: i32, %arg2: memref<1x128x8xf32, #tpu.memory_space<vmem>>, %arg3: memref<1x32x8xf32, #tpu.memory_space<vmem>>, %arg4: memref<8x8xbf16, #tpu.memory_space<vmem>>, %arg5: memref<1x8xf32, #tpu.memory_space<vmem>>, %arg6: memref<8x16xbf16, #tpu.memory_space<vmem>>, %arg7: memref<1x16xf32, #tpu.memory_space<vmem>>, %arg8: memref<8x8xbf16, #tpu.memory_space<vmem>>, %arg9: memref<1x8xf32, #tpu.memory_space<vmem>>, %arg10: memref<1x128x8xf32, #tpu.memory_space<vmem>>) attributes {dimension_semantics = [#tpu.dimension_semantics<parallel>, #tpu.dimension_semantics<parallel>], iteration_bounds = array<i64: 2, 1>, scalar_prefetch = 0 : i64, scratch_operands = 0 : i64, tpu.core_type = #tpu.core_type<tc>, window_params = [{transform_indices = @transform_0, window_bounds = array<i64: 1, 128, 8>}, {transform_indices = @transform_1, window_bounds = array<i64: 1, 32, 8>}, {pipeline_mode = #tpu.pipeline_mode<synchronous>, transform_indices = @transform_2, window_bounds = array<i64: 8, 8>}, {pipeline_mode = #tpu.pipeline_mode<synchronous>, transform_indices = @transform_3, window_bounds = array<i64: 1, 8>}, {pipeline_mode = #tpu.pipeline_mode<synchronous>, transform_indices = @transform_4, window_bounds = array<i64: 8, 16>}, {pipeline_mode = #tpu.pipeline_mode<synchronous>, transform_indices = @transform_5, window_bounds = array<i64: 1, 16>}, {pipeline_mode = #tpu.pipeline_mode<synchronous>, transform_indices = @transform_6, window_bounds = array<i64: 8, 8>}, {pipeline_mode = #tpu.pipeline_mode<synchronous>, transform_indices = @transform_7, window_bounds = array<i64: 1, 8>}, {transform_indices = @transform_8, window_bounds = array<i64: 1, 128, 8>}]} {
    %c0 = arith.constant 0 : index
    %c0_0 = arith.constant 0 : index
    %c0_1 = arith.constant 0 : index
    %0 = vector.load %arg2[%c0, %c0_0, %c0_1] : memref<1x128x8xf32, #tpu.memory_space<vmem>>, vector<1x128x8xf32>
    %1 = vector.shape_cast %0 : vector<1x128x8xf32> to vector<128x8xf32>
    %c0_2 = arith.constant 0 : index
    %c0_3 = arith.constant 0 : index
    %c0_4 = arith.constant 0 : index
    %2 = vector.load %arg3[%c0_2, %c0_3, %c0_4] : memref<1x32x8xf32, #tpu.memory_space<vmem>>, vector<1x32x8xf32>
    %3 = vector.shape_cast %2 : vector<1x32x8xf32> to vector<32x8xf32>
    %4 = arith.truncf %1 : vector<128x8xf32> to vector<128x8xbf16>
    %5 = arith.truncf %3 : vector<32x8xf32> to vector<32x8xbf16>
    %c0_5 = arith.constant 0 : index
    %c0_6 = arith.constant 0 : index
    %6 = vector.load %arg4[%c0_5, %c0_6] : memref<8x8xbf16, #tpu.memory_space<vmem>>, vector<8x8xbf16>
    %cst = arith.constant dense<0.000000e+00> : vector<128x8xf32>
    %7 = tpu.matmul %4, %6, %cst {dimension_numbers = #tpu.dot_dimension_numbers<[1], [0], [0], [1], [0, 0, 1, 1], [], []>} : vector<128x8xbf16>, vector<8x8xbf16>, vector<128x8xf32> -> vector<128x8xf32>
    %c0_7 = arith.constant 0 : index
    %c0_8 = arith.constant 0 : index
    %8 = vector.load %arg5[%c0_7, %c0_8] : memref<1x8xf32, #tpu.memory_space<vmem>>, vector<1x8xf32>
    %9 = vector.broadcast %8 : vector<1x8xf32> to vector<128x8xf32>
    %10 = arith.addf %7, %9 : vector<128x8xf32>
    %c0_9 = arith.constant 0 : index
    %c0_10 = arith.constant 0 : index
    %11 = vector.load %arg6[%c0_9, %c0_10] : memref<8x16xbf16, #tpu.memory_space<vmem>>, vector<8x16xbf16>
    %cst_11 = arith.constant dense<0.000000e+00> : vector<32x16xf32>
    %12 = tpu.matmul %5, %11, %cst_11 {dimension_numbers = #tpu.dot_dimension_numbers<[1], [0], [0], [1], [0, 0, 1, 1], [], []>} : vector<32x8xbf16>, vector<8x16xbf16>, vector<32x16xf32> -> vector<32x16xf32>
    %c0_12 = arith.constant 0 : index
    %c0_13 = arith.constant 0 : index
    %13 = vector.load %arg7[%c0_12, %c0_13] : memref<1x16xf32, #tpu.memory_space<vmem>>, vector<1x16xf32>
    %14 = vector.broadcast %13 : vector<1x16xf32> to vector<32x16xf32>
    %15 = arith.addf %12, %14 : vector<32x16xf32>
    %16 = vector.extract_strided_slice %15 {offsets = [0, 0], sizes = [32, 8], strides = [1, 1]} : vector<32x16xf32> to vector<32x8xf32>
    %17 = vector.extract_strided_slice %15 {offsets = [0, 8], sizes = [32, 8], strides = [1, 1]} : vector<32x16xf32> to vector<32x8xf32>
    %18 = arith.truncf %10 : vector<128x8xf32> to vector<128x8xbf16>
    %19 = arith.truncf %16 : vector<32x8xf32> to vector<32x8xbf16>
    %cst_14 = arith.constant dense<0.000000e+00> : vector<128x32xf32>
    %20 = tpu.matmul %18, %19, %cst_14 {dimension_numbers = #tpu.dot_dimension_numbers<[1], [1], [0], [0], [0, 0, 1, 0], [], []>} : vector<128x8xbf16>, vector<32x8xbf16>, vector<128x32xf32> -> vector<128x32xf32>
    %cst_15 = arith.constant dense<0xFF800000> : vector<128xf32>
    %21 = vector.multi_reduction <maximumf>, %20, %cst_15 [1] : vector<128x32xf32> to vector<128xf32>
    %22 = vector.shape_cast %21 : vector<128xf32> to vector<128x1xf32>
    %23 = vector.broadcast %22 : vector<128x1xf32> to vector<128x32xf32>
    %24 = arith.subf %20, %23 : vector<128x32xf32>
    %25 = math.exp %24 : vector<128x32xf32>
    %cst_16 = arith.constant dense<0.000000e+00> : vector<128xf32>
    %26 = vector.multi_reduction <add>, %25, %cst_16 [1] : vector<128x32xf32> to vector<128xf32>
    %27 = vector.shape_cast %26 : vector<128xf32> to vector<128x1xf32>
    %28 = arith.truncf %25 : vector<128x32xf32> to vector<128x32xbf16>
    %29 = arith.truncf %17 : vector<32x8xf32> to vector<32x8xbf16>
    %cst_17 = arith.constant dense<0.000000e+00> : vector<128x8xf32>
    %30 = tpu.matmul %28, %29, %cst_17 {dimension_numbers = #tpu.dot_dimension_numbers<[1], [0], [0], [1], [0, 0, 1, 1], [], []>} : vector<128x32xbf16>, vector<32x8xbf16>, vector<128x8xf32> -> vector<128x8xf32>
    %31 = tpu.reciprocal %27 {approx = true} : vector<128x1xf32> -> vector<128x1xf32>
    %32 = vector.broadcast %31 : vector<128x1xf32> to vector<128x8xf32>
    %33 = arith.mulf %30, %32 : vector<128x8xf32>
    %34 = arith.truncf %33 : vector<128x8xf32> to vector<128x8xbf16>
    %c0_18 = arith.constant 0 : index
    %c0_19 = arith.constant 0 : index
    %35 = vector.load %arg8[%c0_18, %c0_19] : memref<8x8xbf16, #tpu.memory_space<vmem>>, vector<8x8xbf16>
    %cst_20 = arith.constant dense<0.000000e+00> : vector<128x8xf32>
    %36 = tpu.matmul %34, %35, %cst_20 {dimension_numbers = #tpu.dot_dimension_numbers<[1], [0], [0], [1], [0, 0, 1, 1], [], []>} : vector<128x8xbf16>, vector<8x8xbf16>, vector<128x8xf32> -> vector<128x8xf32>
    %c0_21 = arith.constant 0 : index
    %c0_22 = arith.constant 0 : index
    %37 = vector.load %arg9[%c0_21, %c0_22] : memref<1x8xf32, #tpu.memory_space<vmem>>, vector<1x8xf32>
    %38 = vector.broadcast %37 : vector<1x8xf32> to vector<128x8xf32>
    %39 = arith.addf %36, %38 : vector<128x8xf32>
    %40 = arith.addf %39, %1 : vector<128x8xf32>
    %c0_23 = arith.constant 0 : index
    %c0_24 = arith.constant 0 : index
    %c0_25 = arith.constant 0 : index
    %41 = vector.load %arg10[%c0_23, %c0_24, %c0_25] : memref<1x128x8xf32, #tpu.memory_space<vmem>>, vector<1x128x8xf32>
    %42 = vector.shape_cast %41 : vector<1x128x8xf32> to vector<128x8xf32>
    %43 = vector.shape_cast %40 : vector<128x8xf32> to vector<1x128x8xf32>
    tpu.vector_store %arg10[%c0_23, %c0_24, %c0_25], %43 {strides = array<i32>} : memref<1x128x8xf32, #tpu.memory_space<vmem>>, vector<1x128x8xf32>,
    return
  }
  func.func @transform_0(%arg0: i32, %arg1: i32) -> (i32, i32, i32) {
    %c0_i32 = arith.constant 0 : i32
    %c0_i32_0 = arith.constant 0 : i32
    return %arg0, %arg1, %c0_i32 : i32, i32, i32
  }
  func.func @transform_1(%arg0: i32, %arg1: i32) -> (i32, i32, i32) {
    %c0_i32 = arith.constant 0 : i32
    %c0_i32_0 = arith.constant 0 : i32
    %c0_i32_1 = arith.constant 0 : i32
    return %arg0, %c0_i32, %c0_i32_0 : i32, i32, i32
  }
  func.func @transform_2(%arg0: i32, %arg1: i32) -> (i32, i32) {
    %c0_i32 = arith.constant 0 : i32
    %c0_i32_0 = arith.constant 0 : i32
    %c0_i32_1 = arith.constant 0 : i32
    return %c0_i32, %c0_i32_0 : i32, i32
  }
  func.func @transform_3(%arg0: i32, %arg1: i32) -> (i32, i32) {
    %c0_i32 = arith.constant 0 : i32
    %c0_i32_0 = arith.constant 0 : i32
    %c0_i32_1 = arith.constant 0 : i32
    return %c0_i32, %c0_i32_0 : i32, i32
  }
  func.func @transform_4(%arg0: i32, %arg1: i32) -> (i32, i32) {
    %c0_i32 = arith.constant 0 : i32
    %c0_i32_0 = arith.constant 0 : i32
    %c0_i32_1 = arith.constant 0 : i32
    return %c0_i32, %c0_i32_0 : i32, i32
  }
  func.func @transform_5(%arg0: i32, %arg1: i32) -> (i32, i32) {
    %c0_i32 = arith.constant 0 : i32
    %c0_i32_0 = arith.constant 0 : i32
    %c0_i32_1 = arith.constant 0 : i32
    return %c0_i32, %c0_i32_0 : i32, i32
  }
  func.func @transform_6(%arg0: i32, %arg1: i32) -> (i32, i32) {
    %c0_i32 = arith.constant 0 : i32
    %c0_i32_0 = arith.constant 0 : i32
    %c0_i32_1 = arith.constant 0 : i32
    return %c0_i32, %c0_i32_0 : i32, i32
  }
  func.func @transform_7(%arg0: i32, %arg1: i32) -> (i32, i32) {
    %c0_i32 = arith.constant 0 : i32
    %c0_i32_0 = arith.constant 0 : i32
    %c0_i32_1 = arith.constant 0 : i32
    return %c0_i32, %c0_i32_0 : i32, i32
  }
  func.func @transform_8(%arg0: i32, %arg1: i32) -> (i32, i32, i32) {
    %c0_i32 = arith.constant 0 : i32
    %c0_i32_0 = arith.constant 0 : i32
    return %arg0, %arg1, %c0_i32 : i32, i32, i32
  }
}

</mosaic_0001>

<bundles_post_ra>
// kernel: tpu_custom_call.1
= control target key start
LH: loop header
LB: loop body
LE: loop exit
PB: predicated region body
PF: predicated region fallthrough
CT: control target
= control target key end

     0   :  { %s1664_s27 = smov 0   ;;  %s1666_s28 = smov 0   ;;  %s2014_s0 = inlined_call_operand.vmem [shape: f32[2,128,8], index: 0, kind: input, shape index: {}]   ;;  %s2015_s1 = inlined_call_operand.vmem [shape: f32[2,32,8], index: 1, kind: input, shape index: {}]   ;;  %s2016_s2 = inlined_call_operand.vmem [shape: bf16[8,8], index: 2, kind: input, shape index: {}]   ;;  %s2017_s3 = inlined_call_operand.vmem [shape: f32[1,8], index: 3, kind: input, shape index: {}]   ;;  %s2018_s4 = inlined_call_operand.vmem [shape: bf16[8,16], index: 4, kind: input, shape index: {}]   ;;  %s2019_s5 = inlined_call_operand.vmem [shape: f32[1,16], index: 5, kind: input, shape index: {}]   ;;  %s2020_s6 = inlined_call_operand.vmem [shape: bf16[8,8], index: 6, kind: input, shape index: {}]   ;;  %s2021_s7 = inlined_call_operand.vmem [shape: f32[1,8], index: 7, kind: input, shape index: {}]   ;;  %s2022_s8 = inlined_call_operand.vmem [shape: f32[2,128,8], index: 8, kind: output, shape index: {}]  }
   0x1   :  { %s1668_s29 = smov 0  }
   0x2 LB: > { %s30_s30 = sadd.s32 1, %s1612_s28  ;;  %p1322_p0 = scmp.ge.s32.totalorder %s1616_s29, 1  ;;  %s1616_s29 = sphi %s1668_s29, %s18_s29   ;;  %s1612_s28 = sphi %s1666_s28, %s2024_s28   ;;  %s1608_s27 = sphi %s1664_s27, %s2023_s27  }
   0x3   : > { %p32_p1 = scmp.ge.s32.totalorder %s30_s30, 2  ;;  %p293_p2 = scmp.lt.s32.totalorder %s1616_s29, 3 }
   0x5   : > { %s2026_s30 = smov (%p32_p1, %s30_s30), 0  ;;  %p294_p3 = pnand %p1322_p0, %p293_p2 }
   0x6   : > { %vm429_vm0 = vcmask (!%p294_p3), 1043456   ;;  %v530_v0 = vld [vmem:[%s2018_s4] sm:$0xf] (!%p294_p3)  ;;  %p341_p4 = scmp.lt.s32.totalorder (!%p294_p3), %s1608_s27, 1  ;;  %vm404_vm1 = vcmask (!%p294_p3), 64512   ;;  %vm733_vm2 = vcmask (!%p294_p3), 261120  }
   0x7   : > { %297 = sbr.rel (%p294_p3) target bundleno = 1115 (0x45b), region = 52  ;;  %1499 = vmatprep.subr.msk.bf16.mxu1 (!%p294_p3), %vm429_vm0, %v530_v0  ;;  %v545_v1 = vsel (!%p294_p3), %vm429_vm0, %v530_v0, 0  ;;  %v396_v2 = vld [vmem:[%s2016_s2] sm:$0xf] (!%p294_p3)  ;;  %s1618_s25 = smov (!%p294_p3), 120  }
   0x8   : > { %1431 = vmatpush3.bf16.msra.mxu1 (!%p294_p3), %v545_v1  ;;  %1498 = vmatprep.subr.msk.bf16.mxu0 (!%p294_p3), %vm429_vm0, %v396_v2  ;;  %v431_v3 = vsel (!%p294_p3), %vm429_vm0, %v396_v2, 0  ;;  %v1783_v34 = vld [vmem:[%s2017_s3] ss:$0 sm:$0xff] (!%p294_p3) }
   0x9   : > { %1413 = vmatpush3.bf16.msra.mxu0 (!%p294_p3), %v431_v3  ;;  %v1338_v36 = vld [vmem:[%s2019_s5] ss:$0 sm:$0xff] (!%p294_p3) }
   0xe   : > { %s2028_s27 = smov (!%p341_p4, %s1608_s27), 1 }
   0xf   : > { %s1368_s13 = sshll.u32 %s2028_s27, 7  ;;  %s1369_s14 = sshll.u32 %s2028_s27, 5 }
  0x10   : > { %s1701_s17 = scalar_lea.vmem %s2014_s0, %s1368_s13  ;;  %s354_s20 = scalar_lea.vmem %s2015_s1, %s1369_s14 }
  0x11   : > { %v382_v4 = vld [vmem:[%s354_s20] sm:$0xff]  ;;  %v383_v5 = vld [vmem:[%s354_s20 + $0x8] sm:$0xff]  ;;  %v384_v6 = vld [vmem:[%s354_s20 + $0x10] sm:$0xff]  ;;  %s1955_s15 = scalar_lea.vmem %s2022_s8, %s1368_s13 }
  0x12   : > { %v394_v7 = vpack.c.bf16 %v383_v5, %v382_v4  ;;  %v385_v8 = vld [vmem:[%s354_s20 + $0x18] sm:$0xff]  ;;  %v1707_v9 = vld [vmem:[%s1701_s17] sm:$0xff]  ;;  %v1710_v10 = vld [vmem:[%s1701_s17 + $0x8] sm:$0xff] }
  0x13   : > { %v395_v11 = vpack.c.bf16 %v385_v8, %v384_v6  ;;  %v386_v12 = vpack.c.bf16 %v1710_v10, %v1707_v9  ;;  %v1715_v13 = vld [vmem:[%s1701_s17 + $0x10] sm:$0xff]  ;;  %v1718_v14 = vld [vmem:[%s1701_s17 + $0x18] sm:$0xff]  ;;  %v1721_v15 = vld [vmem:[%s1701_s17 + $0x20] sm:$0xff] }
  0x14   : > { %1432 = vmatprep.mubr.msk.bf16.mxu1 %vm404_vm1, %v394_v7  ;;  %v387_v16 = vpack.c.bf16 %v1718_v14, %v1715_v13  ;;  %v1727_v17 = vld [vmem:[%s1701_s17 + $0x28] sm:$0xff]  ;;  %v1736_v19 = vld [vmem:[%s1701_s17 + $0x30] sm:$0xff]  ;;  %v1739_v20 = vld [vmem:[%s1701_s17 + $0x38] sm:$0xff] }
  0x15   : > { %1433 = vmatmul.mubr.msk.bf16.vlgmr.msra.gmra.mrb[0].mxu1 %vm404_vm1, %v395_v11  ;;  %1414 = vmatprep.mubr.msk.bf16.mxu0 %vm404_vm1, %v386_v12  ;;  %v388_v18 = vpack.c.bf16 %v1727_v17, %v1721_v15  ;;  %v1742_v21 = vld [vmem:[%s1701_s17 + $0x40] sm:$0xff]  ;;  %v1745_v22 = vld [vmem:[%s1701_s17 + $0x48] sm:$0xff]  ;;  %v389_v23 = vpack.c.bf16 %v1739_v20, %v1736_v19  ;;  %v1754_v25 = vld [vmem:[%s1701_s17 + $0x50] sm:$0xff] }
  0x16   : > { %1415 = vmatmul.mubr.msk.bf16.vlgmr.msra.gmra.mrb[0].mxu0 %vm404_vm1, %v387_v16  ;;  %v390_v24 = vpack.c.bf16 %v1745_v22, %v1742_v21  ;;  %v1757_v26 = vld [vmem:[%s1701_s17 + $0x58] sm:$0xff]  ;;  %v1760_v27 = vld [vmem:[%s1701_s17 + $0x60] sm:$0xff]  ;;  %v1763_v28 = vld [vmem:[%s1701_s17 + $0x68] sm:$0xff] }
  0x17   : > { %1418 = vmatprep.mubr.msk.bf16.mxu0 %vm404_vm1, %v388_v18  ;;  %v391_v29 = vpack.c.bf16 %v1757_v26, %v1754_v25  ;;  %v392_v30 = vpack.c.bf16 %v1763_v28, %v1760_v27  ;;  %v1772_v31 = vld [vmem:[%s1701_s17 + $0x70] sm:$0xff]  ;;  %v1775_v32 = vld [vmem:[%s1701_s17 + $0x78] sm:$0xff] }
  0x18   : > { %v393_v33 = vpack.c.bf16 %v1775_v32, %v1772_v31 }
  0x1e   : > { %1419 = vmatmul.mubr.msk.bf16.gmra.mrb[4].mxu0 %vm404_vm1, %v389_v23 }
  0x1f   : > { %1422 = vmatprep.mubr.msk.bf16.mxu0 %vm404_vm1, %v390_v24 }
  0x26   : > { %1423 = vmatmul.mubr.msk.bf16.gmra.mrb[8].mxu0 %vm404_vm1, %v391_v29 }
  0x27   : > { %1426 = vmatprep.mubr.msk.bf16.mxu0 %vm404_vm1, %v392_v30 }
  0x2e   : > { %1427 = vmatmul.mubr.msk.bf16.gmra.mrb[12].mxu0 %vm404_vm1, %v393_v33 }
  0xe8   : > { %v1434_v35 = vpop.f32.mrb[0].mxu1 }
  0xe9   : > { %v581_v37 = vpop.f32.mrb[1].mxu1  ;;  %v1416_v38 = vpop.f32.mrb[0].mxu0  ;;  %v590_v42 = vadd.f32 %v1434_v35, %v1338_v36 }
  0xea   : > { %v1435_v39 = vpop.f32.mrb[2].mxu1  ;;  %v476_v40 = vadd.f32 %v1416_v38, %v1783_v34  ;;  %v467_v41 = vpop.f32.mrb[1].mxu0  ;;  %v582_v47 = vadd.f32 %v1338_v36, %v581_v37 }
  0xeb   : > { %v593_v43 = vadd.f32 %v1435_v39, %v1338_v36  ;;  %v584_v44 = vpop.f32.mrb[3].mxu1  ;;  %v468_v45 = vadd.f32 %v1783_v34, %v467_v41  ;;  %v1417_v46 = vpop.f32.mrb[2].mxu0 }
  0xec   : > { %v585_v48 = vadd.f32 %v1338_v36, %v584_v44  ;;  %v479_v49 = vadd.f32 %v1417_v46, %v1783_v34  ;;  %v470_v50 = vpop.f32.mrb[3].mxu0 }
  0xed   : > { %v1791_v51 = vpack.c.bf16 %v593_v43, %v590_v42  ;;  %v471_v52 = vadd.f32 %v1783_v34, %v470_v50 }
  0xee   : > { %v1794_v53 = vpack.c.bf16 %v585_v48, %v582_v47  ;;  %v597_v54 = vpack.c.bf16 %v479_v49, %v476_v40 }
  0xef   : > { %v596_v55 = vpack.c.bf16 %v471_v52, %v468_v45  ;;  %v634_v3 = vsel %vm404_vm1, %v1791_v51, 0 }
  0xf0   : > { %1500 = vmatprep.subr.msk.bf16.mxu0 %vm404_vm1, %v1794_v53  ;;  %1501 = vmatprep.subr.msk.bf16.mxu1 %vm404_vm1, %v1794_v53  ;;  %v631_v56 = vsel %vm404_vm1, %v1794_v53, 0 }
  0xf1   : > { %1437 = vmatpush3.bf16.xpose.msra.mxu0 %v631_v56  ;;  %1496 = vmatpush3.bf16.xpose.msra.mxu1 %v631_v56  ;;  %v1420_v57 = vpop.f32.mrb[4].mxu0 }
  0xf2   : > { %1502 = vmatprep.subr.msk.bf16.mxu0 %vm404_vm1, %v1791_v51  ;;  %1503 = vmatprep.subr.msk.bf16.mxu1 %vm404_vm1, %v1791_v51  ;;  %v492_v58 = vadd.f32 %v1420_v57, %v1783_v34  ;;  %v483_v59 = vpop.f32.mrb[5].mxu0 }
  0xf3   : > { %v484_v60 = vadd.f32 %v1783_v34, %v483_v59  ;;  %v1421_v61 = vpop.f32.mrb[6].mxu0  ;;  %1440 = vmatprep.mubr.msk.bf16.mxu0 %vm404_vm1, %v596_v55 }
  0xf4   : > { %v495_v62 = vadd.f32 %v1421_v61, %v1783_v34  ;;  %v486_v63 = vpop.f32.mrb[7].mxu0 }
  0xf5   : > { %v487_v0 = vadd.f32 %v1783_v34, %v486_v63 }
  0xf6   : > { %v599_v1 = vpack.c.bf16 %v495_v62, %v492_v58 }
  0xf7   : > { %v598_v2 = vpack.c.bf16 %v487_v0, %v484_v60 }
  0xf9   : > { %1439 = vmatpush3.bf16.xpose.msra.mxu0 %v634_v3  ;;  %1497 = vmatpush3.bf16.xpose.msra.mxu1 %v634_v3  ;;  %v1424_v4 = vpop.f32.mrb[8].mxu0 }
  0xfa   : > { %1444 = vmatprep.mubr.msk.bf16.mxu1 %vm404_vm1, %v598_v2  ;;  %v508_v5 = vadd.f32 %v1424_v4, %v1783_v34  ;;  %v499_v6 = vpop.f32.mrb[9].mxu0 }
  0xfb   : > { %v500_v7 = vadd.f32 %v1783_v34, %v499_v6  ;;  %v1425_v8 = vpop.f32.mrb[10].mxu0 }
  0xfc   : > { %v511_v11 = vadd.f32 %v1425_v8, %v1783_v34  ;;  %v502_v12 = vpop.f32.mrb[11].mxu0 }
  0xfd   : > { %v503_v16 = vadd.f32 %v1783_v34, %v502_v12 }
  0xfe   : > { %v601_v18 = vpack.c.bf16 %v511_v11, %v508_v5 }
  0xff   : > { %v600_v23 = vpack.c.bf16 %v503_v16, %v500_v7 }
 0x100   : > { %1441 = vmatmul.mubr.msk.bf16.vlgmr.msra.gmra.mrb[16].mxu0 %vm404_vm1, %v597_v54  ;;  %1445 = vmatmul.mubr.msk.bf16.vlgmr.msra.gmra.mrb[4].mxu1 %vm404_vm1, %v599_v1 }
 0x101   : > { %1448 = vmatprep.mubr.msk.bf16.mxu1 %vm404_vm1, %v600_v23  ;;  %v1428_v24 = vpop.f32.mrb[12].mxu0 }
 0x102   : > { %v524_v29 = vadd.f32 %v1428_v24, %v1783_v34  ;;  %v515_v30 = vpop.f32.mrb[13].mxu0 }
 0x103   : > { %v516_v33 = vadd.f32 %v1783_v34, %v515_v30  ;;  %v1429_v35 = vpop.f32.mrb[14].mxu0 }
 0x104   : > { %v527_v36 = vadd.f32 %v1429_v35, %v1783_v34  ;;  %v518_v37 = vpop.f32.mrb[15].mxu0 }
 0x105   : > { %v519_v38 = vadd.f32 %v1783_v34, %v518_v37 }
 0x106   : > { %v603_v39 = vpack.c.bf16 %v527_v36, %v524_v29 }
 0x107   : > { %v602_v40 = vpack.c.bf16 %v519_v38, %v516_v33 }
 0x108   : > { %1449 = vmatmul.mubr.msk.bf16.gmra.mrb[8].mxu1 %vm404_vm1, %v601_v18 }
 0x109   : > { %1452 = vmatprep.mubr.msk.bf16.mxu1 %vm404_vm1, %v602_v40 }
 0x110   : > { %1453 = vmatmul.mubr.msk.bf16.gmra.mrb[12].mxu1 %vm404_vm1, %v603_v39 }
 0x1d3   : > { %v1442_v41 = vpop.f32.mrb[16].mxu0  ;;  %v1828_v42 = vpop.f32.mrb[4].mxu1 }
 0x1d4   : > { %v752_v43 = vsel %vm733_vm2, %v1828_v42, -inf  ;;  %v740_v44 = vsel %vm733_vm2, %v1442_v41, -inf  ;;  %v670_v45 = vpop.f32.mrb[17].mxu0  ;;  %v1833_v46 = vpop.f32.mrb[5].mxu1 }
 0x1d5   : > { %753 = vmax.xlane.f32.xlu0 %v752_v43  ;;  %741 = vmax.xlane.f32.xlu1 %v740_v44  ;;  %v1443_v34 = vpop.f32.mrb[18].mxu0  ;;  %v1447_v47 = vpop.f32.mrb[6].mxu1  ;;  %v734_v50 = vsel %vm733_vm2, %v670_v45, -inf  ;;  %v746_v55 = vsel %vm733_vm2, %v1833_v46, -inf }
 0x1d6   : > { %v1835_v48 = vpop.f32.mrb[19].mxu0  ;;  %v1837_v49 = vpop.f32.mrb[7].mxu1  ;;  %v743_v52 = vsel %vm733_vm2, %v1443_v34, -inf  ;;  %v755_v56 = vsel %vm733_vm2, %v1447_v47, -inf }
 0x1d7   : > { %v749_v60 = vsel %vm733_vm2, %v1837_v49, -inf  ;;  %v737_v61 = vsel %vm733_vm2, %v1835_v48, -inf }
 0x1d9   : > { %735 = vmax.xlane.f32.xlu0 %v734_v50  ;;  %744 = vmax.xlane.f32.xlu1 %v743_v52 }
 0x1db   : > { %v1841_v54 = vpop.f32.mrb[8].mxu1 }
 0x1dc   : > { %v1846_v57 = vpop.f32.mrb[9].mxu1  ;;  %v764_v0 = vsel %vm733_vm2, %v1841_v54, -inf }
 0x1dd   : > { %747 = vmax.xlane.f32.xlu0 %v746_v55  ;;  %756 = vmax.xlane.f32.xlu1 %v755_v56  ;;  %v1848_v58 = vpop.f32.mrb[10].mxu1  ;;  %v758_v5 = vsel %vm733_vm2, %v1846_v57, -inf }
 0x1de   : > { %v1850_v59 = vpop.f32.mrb[11].mxu1  ;;  %v767_v63 = vsel %vm733_vm2, %v1848_v58, -inf }
 0x1df   : > { %v761_v4 = vsel %vm733_vm2, %v1850_v59, -inf }
 0x1e1   : > { %750 = vmax.xlane.f32.xlu1 %v749_v60  ;;  %738 = vmax.xlane.f32.xlu0 %v737_v61 }
 0x1e3   : > { %v1856_v62 = vpop.f32.mrb[12].mxu1 }
 0x1e4   : > { %v1862_v1 = vpop.f32.mrb[13].mxu1  ;;  %v776_v6 = vsel %vm733_vm2, %v1856_v62, -inf }
 0x1e5   : > { %768 = vmax.xlane.f32.xlu1 %v767_v63  ;;  %765 = vmax.xlane.f32.xlu0 %v764_v0  ;;  %v1864_v2 = vpop.f32.mrb[14].mxu1  ;;  %v770_v7 = vsel %vm733_vm2, %v1862_v1, -inf }
 0x1e6   : > { %v1866_v3 = vpop.f32.mrb[15].mxu1  ;;  %v779_v8 = vsel %vm733_vm2, %v1864_v2, -inf }
 0x1e7   : > { %v773_v11 = vsel %vm733_vm2, %v1866_v3, -inf }
 0x1e9   : > { %762 = vmax.xlane.f32.xlu1 %v761_v4  ;;  %759 = vmax.xlane.f32.xlu0 %v758_v5 }
 0x1ed   : > { %777 = vmax.xlane.f32.xlu1 %v776_v6  ;;  %771 = vmax.xlane.f32.xlu0 %v770_v7 }
 0x1f1   : > { %780 = vmax.xlane.f32.xlu1 %v779_v8 }
 0x1f5   : > { %774 = vmax.xlane.f32.xlu1 %v773_v11 }
 0x203   : > { %888 = vrot.lane.b32.xlu0 %v1794_v53, %s1618_s25 }
 0x206   : > { %890 = vrot.lane.b32.xlu1 %v1791_v51, %s1618_s25 }
 0x262   : > { %v754_v12 = vpop.xlane.xlu0 %753  ;;  %v742_v16 = vpop.xlane.xlu1 %741 }
 0x263   : > { %v784_v18 = vsub.f32 %v1442_v41, %v742_v16  ;;  %v788_v33 = vsub.f32 %v1828_v42, %v754_v12 }
 0x265   : > { %v802_v35 = vmul.f32 1.442695, %v784_v18  ;;  %v810_v51 = vmul.f32 1.442695, %v788_v33 }
 0x266   : > { %v736_v23 = vpop.xlane.xlu0 %735  ;;  %v745_v24 = vpop.xlane.xlu1 %744 }
 0x267   : > { %v782_v29 = vsub.f32 %v670_v45, %v736_v23  ;;  %v785_v30 = vsub.f32 %v1443_v34, %v745_v24 }
 0x269   : > { %v798_v36 = vmul.f32 1.442695, %v782_v29  ;;  %v804_v37 = vmul.f32 1.442695, %v785_v30 }
 0x26a   : > { %v748_v38 = vpop.xlane.xlu0 %747  ;;  %v757_v39 = vpop.xlane.xlu1 %756 }
 0x26b   : > { %1530 = vpow2.f32 %v798_v36  ;;  %v786_v40 = vsub.f32 %v1833_v46, %v748_v38  ;;  %v789_v53 = vsub.f32 %v1447_v47, %v757_v39 }
 0x26c   : > { %1532 = vpow2.f32 %v804_v37 }
 0x26d   : > { %1534 = vpow2.f32 %v802_v35  ;;  %v812_v43 = vmul.f32 1.442695, %v789_v53  ;;  %v806_v41 = vmul.f32 1.442695, %v786_v40 }
 0x26e   : > { %v751_v44 = vpop.xlane.xlu1 %750  ;;  %v739_v50 = vpop.xlane.xlu0 %738 }
 0x26f   : > { %v787_v45 = vsub.f32 %v1837_v49, %v751_v44  ;;  %v783_v42 = vsub.f32 %v1835_v48, %v739_v50  ;;  %1536 = vpow2.f32 %v812_v43 }
 0x270   : > { %1538 = vpow2.f32 %v810_v51 }
 0x271   : > { %v808_v34 = vmul.f32 1.442695, %v787_v45  ;;  %v800_v52 = vmul.f32 1.442695, %v783_v42  ;;  %1540 = vpow2.f32 %v806_v41 }
 0x272   : > { %v769_v55 = vpop.xlane.xlu1 %768  ;;  %v766_v56 = vpop.xlane.xlu0 %765 }
 0x273   : > { %1542 = vpow2.f32 %v808_v34  ;;  %v793_v46 = vsub.f32 %v1848_v58, %v769_v55  ;;  %v792_v47 = vsub.f32 %v1841_v54, %v766_v56 }
 0x274   : > { %1544 = vpow2.f32 %v800_v52 }
 0x275   : > { %v1531_v60 = vpop.eup %1530  ;;  %v820_v61 = vmul.f32 1.442695, %v793_v46  ;;  %v818_v63 = vmul.f32 1.442695, %v792_v47 }
 0x276   : > { %v1888_v0 = vpop.eup %1532  ;;  %v763_v49 = vpop.xlane.xlu1 %762  ;;  %v830_v4 = vsel %vm733_vm2, %v1531_v60, 0.0 }
 0x277   : > { %v760_v48 = vpop.xlane.xlu0 %759  ;;  %v1891_v5 = vpop.eup %1534  ;;  %1546 = vpow2.f32 %v820_v61  ;;  %v791_v6 = vsub.f32 %v1850_v59, %v763_v49  ;;  %831 = vadd.xlane.f32.xlu0 %v830_v4  ;;  %v839_v38 = vsel %vm733_vm2, %v1888_v0, 0.0 }
 0x278   : > { %v790_v7 = vsub.f32 %v1846_v57, %v760_v48  ;;  %1548 = vpow2.f32 %v818_v63  ;;  %v879_v54 = vpack.c.bf16 %v1888_v0, %v1891_v5  ;;  %v836_v18 = vsel %vm733_vm2, %v1891_v5, 0.0 }
 0x279   : > { %v816_v58 = vmul.f32 1.442695, %v791_v6  ;;  %v1897_v11 = vpop.eup %1536 }
 0x27a   : > { %v814_v8 = vmul.f32 1.442695, %v790_v7  ;;  %v778_v12 = vpop.xlane.xlu1 %777  ;;  %v1901_v23 = vpop.eup %1538  ;;  %v851_v47 = vsel %vm733_vm2, %v1897_v11, 0.0 }
 0x27b   : > { %v772_v16 = vpop.xlane.xlu0 %771  ;;  %1550 = vpow2.f32 %v816_v58  ;;  %v796_v59 = vsub.f32 %v1856_v62, %v778_v12  ;;  %837 = vadd.xlane.f32.xlu0 %v836_v18  ;;  %v1541_v57 = vpop.eup %1540  ;;  %v881_v24 = vpack.c.bf16 %v1897_v11, %v1901_v23  ;;  %v848_v46 = vsel %vm733_vm2, %v1901_v23, 0.0  ;;  %v1055_v12 = vld [vmem:[%s2020_s6] sm:$0xf] }
 0x27c   : > { %1552 = vpow2.f32 %v814_v8  ;;  %v794_v30 = vsub.f32 %v1862_v1, %v772_v16  ;;  %v842_v50 = vsel %vm733_vm2, %v1541_v57, 0.0  ;;  %1504 = vmatprep.subr.msk.bf16.mxu1 %vm429_vm0, %v1055_v12  ;;  %v1088_v16 = vsel %vm429_vm0, %v1055_v12, 0 }
 0x27d   : > { %v1543_v29 = vpop.eup %1542  ;;  %v826_v35 = vmul.f32 1.442695, %v796_v59  ;;  %1477 = vmatpush3.bf16.msra.mxu1 %v1088_v16 }
 0x27e   : > { %v1545_v33 = vpop.eup %1544  ;;  %v781_v36 = vpop.xlane.xlu1 %780  ;;  %v880_v39 = vpack.c.bf16 %v1543_v29, %v1541_v57  ;;  %v822_v43 = vmul.f32 1.442695, %v794_v30  ;;  %v845_v45 = vsel %vm733_vm2, %v1543_v29, 0.0 }
 0x27f   : > { %v889_v37 = vpop.permute.xlu0 %888  ;;  %v797_v40 = vsub.f32 %v1864_v2, %v781_v36  ;;  %840 = vadd.xlane.f32.xlu0 %v839_v38  ;;  %v833_v62 = vsel %vm733_vm2, %v1545_v33, 0.0  ;;  %v878_v53 = vpack.c.bf16 %v1545_v33, %v1531_v60  ;;  %1554 = vpow2.f32 %v826_v35 }
 0x280   : > { %1456 = vmatprep.subr.bf16.mxu0 %v889_v37  ;;  %834 = vadd.xlane.f32.xlu1 %v833_v62 }
 0x281   : > { %1457 = vmatpush3.bf16.msra.mxu0 %v889_v37  ;;  %v1547_v51 = vpop.eup %1546  ;;  %v828_v1 = vmul.f32 1.442695, %v797_v40  ;;  %1460 = vmatprep.mubr.msk.bf16.mxu0 %vm733_vm2, %v878_v53 }
 0x282   : > { %v1549_v41 = vpop.eup %1548  ;;  %v775_v44 = vpop.xlane.xlu1 %774  ;;  %v863_v5 = vsel %vm733_vm2, %v1547_v51, 0.0 }
 0x283   : > { %1556 = vpow2.f32 %v828_v1  ;;  %v795_v2 = vsub.f32 %v1866_v3, %v775_v44  ;;  %843 = vadd.xlane.f32.xlu0 %v842_v50  ;;  %v883_v42 = vpack.c.bf16 %v1547_v51, %v1549_v41  ;;  %v860_v49 = vsel %vm733_vm2, %v1549_v41, 0.0 }
 0x284   : > { %846 = vadd.xlane.f32.xlu1 %v845_v45  ;;  %1558 = vpow2.f32 %v822_v43 }
 0x285   : > { %v1551_v34 = vpop.eup %1550  ;;  %v824_v52 = vmul.f32 1.442695, %v795_v2 }
 0x286   : > { %v1553_v55 = vpop.eup %1552  ;;  %v891_v56 = vpop.permute.xlu1 %890  ;;  %v857_v61 = vsel %vm733_vm2, %v1551_v34, 0.0 }
 0x287   : > { %1560 = vpow2.f32 %v824_v52  ;;  %849 = vadd.xlane.f32.xlu0 %v848_v46  ;;  %1458 = vmatprep.subr.bf16.mxu0 %v891_v56  ;;  %v882_v3 = vpack.c.bf16 %v1551_v34, %v1553_v55  ;;  %v854_v60 = vsel %vm733_vm2, %v1553_v55, 0.0 }
 0x288   : > { %852 = vadd.xlane.f32.xlu1 %v851_v47  ;;  %1459 = vmatpush3.bf16.msra.mxu0 %v891_v56 }
 0x289   : > { %v1555_v63 = vpop.eup %1554 }
 0x28b   : > { %855 = vadd.xlane.f32.xlu0 %v854_v60  ;;  %1461 = vmatmul.mubr.msk.bf16.vlgmr.msra.gmra.mrb[20].mxu0 %vm733_vm2, %v879_v54  ;;  %v872_v54 = vsel %vm733_vm2, %v1555_v63, 0.0 }
 0x28c   : > { %858 = vadd.xlane.f32.xlu1 %v857_v61  ;;  %1464 = vmatprep.mubr.msk.bf16.mxu0 %vm733_vm2, %v880_v39 }
 0x28d   : > { %v1557_v0 = vpop.eup %1556 }
 0x28e   : > { %v885_v48 = vpack.c.bf16 %v1557_v0, %v1555_v63  ;;  %v1559_v4 = vpop.eup %1558  ;;  %v875_v11 = vsel %vm733_vm2, %v1557_v0, 0.0 }
 0x28f   : > { %861 = vadd.xlane.f32.xlu0 %v860_v49  ;;  %v866_v58 = vsel %vm733_vm2, %v1559_v4, 0.0 }
 0x290   : > { %864 = vadd.xlane.f32.xlu1 %v863_v5 }
 0x291   : > { %v1561_v6 = vpop.eup %1560 }
 0x292   : > { %v869_v7 = vsel %vm733_vm2, %v1561_v6, 0.0  ;;  %v884_v8 = vpack.c.bf16 %v1561_v6, %v1559_v4 }
 0x293   : > { %867 = vadd.xlane.f32.xlu0 %v866_v58  ;;  %1465 = vmatmul.mubr.msk.bf16.gmra.mrb[24].mxu0 %vm733_vm2, %v881_v24 }
 0x294   : > { %870 = vadd.xlane.f32.xlu1 %v869_v7  ;;  %1468 = vmatprep.mubr.msk.bf16.mxu0 %vm733_vm2, %v882_v3 }
 0x297   : > { %873 = vadd.xlane.f32.xlu0 %v872_v54 }
 0x298   : > { %876 = vadd.xlane.f32.xlu1 %v875_v11 }
 0x29b   : > { %1469 = vmatmul.mubr.msk.bf16.gmra.mrb[28].mxu0 %vm733_vm2, %v883_v42 }
 0x29c   : > { %1472 = vmatprep.mubr.msk.bf16.mxu0 %vm733_vm2, %v884_v8 }
 0x2a3   : > { %1473 = vmatmul.mubr.msk.bf16.gmra.mrb[32].mxu0 %vm733_vm2, %v885_v48 }
 0x304   : > { %v832_v18 = vpop.xlane.xlu0 %831 }
 0x305   : > { %1562 = vrcp.f32 %v832_v18 }
 0x308   : > { %v838_v23 = vpop.xlane.xlu0 %837 }
 0x309   : > { %1564 = vrcp.f32 %v838_v23 }
 0x30c   : > { %v841_v59 = vpop.xlane.xlu0 %840 }
 0x30d   : > { %v835_v57 = vpop.xlane.xlu1 %834  ;;  %1566 = vrcp.f32 %v841_v59 }
 0x30e   : > { %1568 = vrcp.f32 %v835_v57 }
 0x30f   : > { %v1563_v37 = vpop.eup %1562 }
 0x310   : > { %v844_v24 = vpop.xlane.xlu0 %843 }
 0x311   : > { %v847_v29 = vpop.xlane.xlu1 %846  ;;  %1570 = vrcp.f32 %v844_v24 }
 0x313   : > { %v1565_v40 = vpop.eup %1564 }
 0x314   : > { %v850_v30 = vpop.xlane.xlu0 %849 }
 0x315   : > { %v853_v33 = vpop.xlane.xlu1 %852  ;;  %1572 = vrcp.f32 %v850_v30 }
 0x316   : > { %1574 = vrcp.f32 %v853_v33 }
 0x317   : > { %1576 = vrcp.f32 %v847_v29  ;;  %v1567_v51 = vpop.eup %1566 }
 0x318   : > { %v856_v35 = vpop.xlane.xlu0 %855  ;;  %v1569_v1 = vpop.eup %1568 }
 0x319   : > { %v859_v36 = vpop.xlane.xlu1 %858  ;;  %1578 = vrcp.f32 %v856_v35 }
 0x31b   : > { %v1571_v56 = vpop.eup %1570 }
 0x31c   : > { %v862_v38 = vpop.xlane.xlu0 %861 }
 0x31d   : > { %v865_v62 = vpop.xlane.xlu1 %864  ;;  %1580 = vrcp.f32 %v862_v38 }
 0x31e   : > { %1582 = vrcp.f32 %v865_v62 }
 0x31f   : > { %v1573_v47 = vpop.eup %1572  ;;  %1584 = vrcp.f32 %v859_v36 }
 0x320   : > { %v868_v34 = vpop.xlane.xlu0 %867  ;;  %v1575_v60 = vpop.eup %1574 }
 0x321   : > { %v871_v55 = vpop.xlane.xlu1 %870  ;;  %v1577_v63 = vpop.eup %1576  ;;  %1586 = vrcp.f32 %v868_v34 }
 0x323   : > { %v1579_v54 = vpop.eup %1578 }
 0x324   : > { %v874_v4 = vpop.xlane.xlu0 %873 }
 0x325   : > { %v877_v7 = vpop.xlane.xlu1 %876  ;;  %1588 = vrcp.f32 %v874_v4 }
 0x326   : > { %1590 = vrcp.f32 %v877_v7 }
 0x327   : > { %v1581_v12 = vpop.eup %1580  ;;  %1592 = vrcp.f32 %v871_v55 }
 0x328   : > { %v1583_v18 = vpop.eup %1582 }
 0x329   : > { %v1585_v59 = vpop.eup %1584 }
 0x35e   : > { %v1462_v39 = vpop.f32.mrb[20].mxu0 }
 0x35f   : > { %v952_v53 = vpop.f32.mrb[21].mxu0  ;;  %v1033_v41 = vmul.f32 %v1565_v40, %v1462_v39 }
 0x360   : > { %v1463_v43 = vpop.f32.mrb[22].mxu0  ;;  %v1031_v2 = vmul.f32 %v1563_v37, %v952_v53  ;;  %v1587_v37 = vpop.eup %1586 }
 0x361   : > { %v1034_v44 = vmul.f32 %v1567_v51, %v1463_v43  ;;  %v955_v50 = vpop.f32.mrb[23].mxu0  ;;  %v1589_v39 = vpop.eup %1588 }
 0x362   : > { %v1032_v45 = vmul.f32 %v1569_v1, %v955_v50  ;;  %v1591_v62 = vpop.eup %1590 }
 0x363   : > { %v1048_v42 = vpack.c.bf16 %v1034_v44, %v1033_v41  ;;  %v1593_v51 = vpop.eup %1592 }
 0x364   : > { %v1047_v52 = vpack.c.bf16 %v1032_v45, %v1031_v2 }
 0x366   : > { %v1466_v46 = vpop.f32.mrb[24].mxu0  ;;  %1478 = vmatprep.mubr.msk.bf16.mxu1 %vm404_vm1, %v1047_v52 }
 0x367   : > { %v968_v3 = vpop.f32.mrb[25].mxu0  ;;  %1479 = vmatmul.mubr.msk.bf16.vlgmr.msra.gmra.mrb[16].mxu1 %vm404_vm1, %v1048_v42  ;;  %v1037_v0 = vmul.f32 %v1573_v47, %v1466_v46  ;;  %v1357_v42 = vld [vmem:[%s2021_s7] ss:$0 sm:$0xff] }
 0x368   : > { %v1467_v61 = vpop.f32.mrb[26].mxu0  ;;  %v1035_v5 = vmul.f32 %v1571_v56, %v968_v3 }
 0x369   : > { %v1038_v49 = vmul.f32 %v1575_v60, %v1467_v61  ;;  %v971_v48 = vpop.f32.mrb[27].mxu0 }
 0x36a   : > { %v1036_v6 = vmul.f32 %v1577_v63, %v971_v48 }
 0x36b   : > { %v1050_v58 = vpack.c.bf16 %v1038_v49, %v1037_v0 }
 0x36c   : > { %v1049_v8 = vpack.c.bf16 %v1036_v6, %v1035_v5 }
 0x36e   : > { %v1470_v11 = vpop.f32.mrb[28].mxu0  ;;  %1482 = vmatprep.mubr.msk.bf16.mxu1 %vm404_vm1, %v1049_v8 }
 0x36f   : > { %v984_v16 = vpop.f32.mrb[29].mxu0  ;;  %1483 = vmatmul.mubr.msk.bf16.gmra.mrb[20].mxu1 %vm404_vm1, %v1050_v58  ;;  %v1041_v57 = vmul.f32 %v1581_v12, %v1470_v11 }
 0x370   : > { %v1471_v23 = vpop.f32.mrb[30].mxu0  ;;  %v1039_v30 = vmul.f32 %v1579_v54, %v984_v16 }
 0x371   : > { %v1042_v24 = vmul.f32 %v1583_v18, %v1471_v23  ;;  %v987_v29 = vpop.f32.mrb[31].mxu0 }
 0x372   : > { %v1040_v33 = vmul.f32 %v1585_v59, %v987_v29 }
 0x373   : > { %v1052_v35 = vpack.c.bf16 %v1042_v24, %v1041_v57 }
 0x374   : > { %v1051_v36 = vpack.c.bf16 %v1040_v33, %v1039_v30 }
 0x376   : > { %v1474_v38 = vpop.f32.mrb[32].mxu0  ;;  %1486 = vmatprep.mubr.msk.bf16.mxu1 %vm404_vm1, %v1051_v36 }
 0x377   : > { %v1000_v40 = vpop.f32.mrb[33].mxu0  ;;  %1487 = vmatmul.mubr.msk.bf16.gmra.mrb[24].mxu1 %vm404_vm1, %v1052_v35  ;;  %v1045_v43 = vmul.f32 %v1589_v39, %v1474_v38 }
 0x378   : > { %v1475_v53 = vpop.f32.mrb[34].mxu0  ;;  %v1043_v44 = vmul.f32 %v1587_v37, %v1000_v40 }
 0x379   : > { %v1046_v1 = vmul.f32 %v1591_v62, %v1475_v53  ;;  %v1003_v41 = vpop.f32.mrb[35].mxu0 }
 0x37a   : > { %v1044_v50 = vmul.f32 %v1593_v51, %v1003_v41 }
 0x37b   : > { %v1054_v2 = vpack.c.bf16 %v1046_v1, %v1045_v43 }
 0x37c   : > { %v1053_v45 = vpack.c.bf16 %v1044_v50, %v1043_v44 }
 0x37e   : > { %1490 = vmatprep.mubr.msk.bf16.mxu1 %vm404_vm1, %v1053_v45 }
 0x37f   : > { %1491 = vmatmul.mubr.msk.bf16.gmra.mrb[28].mxu1 %vm404_vm1, %v1054_v2 }
 0x43a   : > { %v1480_v34 = vpop.f32.mrb[16].mxu1 }
 0x43b   : > { %v1133_v52 = vadd.f32 %v1480_v34, %v1357_v42  ;;  %v1124_v55 = vpop.f32.mrb[17].mxu1 }
 0x43c   : > { %v1125_v56 = vadd.f32 %v1357_v42, %v1124_v55  ;;  %v1481_v46 = vpop.f32.mrb[18].mxu1 }
 0x43d   : > { %v1189_v47 = vadd.f32 %v1133_v52, %v1715_v13  ;;  %v1136_v3 = vadd.f32 %v1481_v46, %v1357_v42  ;;  %v1127_v60 = vpop.f32.mrb[19].mxu1 }
 0x43e   : > { %v1187_v61 = vadd.f32 %v1125_v56, %v1707_v9  ;;  %v1128_v63 = vadd.f32 %v1357_v42, %v1127_v60 }
 0x43f   : > { %1205 = vst.msk [vmem:[%s1955_s15 + $0x10] sm:$0xff] %vm404_vm1, %v1189_v47  ;;  %v1190_v0 = vadd.f32 %v1136_v3, %v1718_v14 }
 0x440   : > { %1203 = vst.msk [vmem:[%s1955_s15] sm:$0xff] %vm404_vm1, %v1187_v61  ;;  %v1188_v49 = vadd.f32 %v1128_v63, %v1710_v10 }
 0x441   : > { %1206 = vst.msk [vmem:[%s1955_s15 + $0x18] sm:$0xff] %vm404_vm1, %v1190_v0 }
 0x442   : > { %1204 = vst.msk [vmem:[%s1955_s15 + $0x8] sm:$0xff] %vm404_vm1, %v1188_v49  ;;  %v1484_v13 = vpop.f32.mrb[20].mxu1 }
 0x443   : > { %v1149_v48 = vadd.f32 %v1484_v13, %v1357_v42  ;;  %v1140_v9 = vpop.f32.mrb[21].mxu1 }
 0x444   : > { %v1141_v4 = vadd.f32 %v1357_v42, %v1140_v9  ;;  %v1485_v5 = vpop.f32.mrb[22].mxu1 }
 0x445   : > { %v1193_v6 = vadd.f32 %v1149_v48, %v1736_v19  ;;  %v1152_v7 = vadd.f32 %v1485_v5, %v1357_v42  ;;  %v1143_v14 = vpop.f32.mrb[23].mxu1 }
 0x446   : > { %v1191_v58 = vadd.f32 %v1141_v4, %v1721_v15  ;;  %v1144_v8 = vadd.f32 %v1357_v42, %v1143_v14 }
 0x447   : > { %1209 = vst.msk [vmem:[%s1955_s15 + $0x30] sm:$0xff] %vm404_vm1, %v1193_v6  ;;  %v1194_v10 = vadd.f32 %v1152_v7, %v1739_v20 }
 0x448   : > { %1207 = vst.msk [vmem:[%s1955_s15 + $0x20] sm:$0xff] %vm404_vm1, %v1191_v58  ;;  %v1192_v54 = vadd.f32 %v1144_v8, %v1727_v17 }
 0x449   : > { %1210 = vst.msk [vmem:[%s1955_s15 + $0x38] sm:$0xff] %vm404_vm1, %v1194_v10 }
 0x44a   : > { %1208 = vst.msk [vmem:[%s1955_s15 + $0x28] sm:$0xff] %vm404_vm1, %v1192_v54  ;;  %v1488_v19 = vpop.f32.mrb[24].mxu1 }
 0x44b   : > { %v1165_v11 = vadd.f32 %v1488_v19, %v1357_v42  ;;  %v1156_v15 = vpop.f32.mrb[25].mxu1 }
 0x44c   : > { %v1157_v12 = vadd.f32 %v1357_v42, %v1156_v15  ;;  %v1489_v16 = vpop.f32.mrb[26].mxu1 }
 0x44d   : > { %v1197_v18 = vadd.f32 %v1165_v11, %v1754_v25  ;;  %v1168_v23 = vadd.f32 %v1489_v16, %v1357_v42  ;;  %v1159_v20 = vpop.f32.mrb[27].mxu1 }
 0x44e   : > { %v1195_v59 = vadd.f32 %v1157_v12, %v1742_v21  ;;  %v1160_v57 = vadd.f32 %v1357_v42, %v1159_v20 }
 0x44f   : > { %1213 = vst.msk [vmem:[%s1955_s15 + $0x50] sm:$0xff] %vm404_vm1, %v1197_v18  ;;  %v1198_v17 = vadd.f32 %v1168_v23, %v1757_v26 }
 0x450   : > { %1211 = vst.msk [vmem:[%s1955_s15 + $0x40] sm:$0xff] %vm404_vm1, %v1195_v59  ;;  %v1196_v24 = vadd.f32 %v1160_v57, %v1745_v22 }
 0x451   : > { %1214 = vst.msk [vmem:[%s1955_s15 + $0x58] sm:$0xff] %vm404_vm1, %v1198_v17 }
 0x452   : > { %1212 = vst.msk [vmem:[%s1955_s15 + $0x48] sm:$0xff] %vm404_vm1, %v1196_v24  ;;  %v1492_v25 = vpop.f32.mrb[28].mxu1 }
 0x453   : > { %v1181_v29 = vadd.f32 %v1492_v25, %v1357_v42  ;;  %v1172_v21 = vpop.f32.mrb[29].mxu1 }
 0x454   : > { %v1173_v30 = vadd.f32 %v1357_v42, %v1172_v21  ;;  %v1493_v33 = vpop.f32.mrb[30].mxu1 }
 0x455   : > { %v1201_v35 = vadd.f32 %v1181_v29, %v1772_v31  ;;  %v1184_v36 = vadd.f32 %v1493_v33, %v1357_v42  ;;  %v1175_v26 = vpop.f32.mrb[31].mxu1 }
 0x456   : > { %v1199_v37 = vadd.f32 %v1173_v30, %v1760_v27  ;;  %v1176_v38 = vadd.f32 %v1357_v42, %v1175_v26 }
 0x457   : > { %1217 = vst.msk [vmem:[%s1955_s15 + $0x70] sm:$0xff] %vm404_vm1, %v1201_v35  ;;  %v1202_v22 = vadd.f32 %v1184_v36, %v1775_v32 }
 0x458   : > { %1215 = vst.msk [vmem:[%s1955_s15 + $0x60] sm:$0xff] %vm404_vm1, %v1199_v37  ;;  %v1200_v39 = vadd.f32 %v1176_v38, %v1763_v28 }
 0x459   : > { %1218 = vst.msk [vmem:[%s1955_s15 + $0x78] sm:$0xff] %vm404_vm1, %v1202_v22 }
 0x45a   : > { %1216 = vst.msk [vmem:[%s1955_s15 + $0x68] sm:$0xff] %vm404_vm1, %v1200_v39 }
 0x45b PF: > { %s18_s29 = sadd.s32 1, %s1616_s29   ;;  %s2023_s27 = smov %s1612_s28 }
 0x45c   : > { %p15_p5 = scmp.ge.s32.totalorder %s18_s29, 4   ;;  %s2024_s28 = smov %s2026_s30 }
 0x45e   :  { %17 = sbr.rel (!%p15_p5) target bundleno = 2 (0x2), region = 85 }

</bundles_post_ra>
